<compile_context>
chip_gen: v7x
topology: tpu7x:2x2x1
jax: 0.10.0
libtpu: 0.0.40
codegen_flags: <defaults>
</compile_context>

<pallas_src>
import functools

import jax
import jax.numpy as jnp
from jax.experimental import pallas as pl
from jax.experimental.pallas import tpu as pltpu

LANE = 128
_MiB = 1024 * 1024


def _round_up(n, m):
    return ((n + m - 1) // m) * m


def _autoencoder_kernel(
    x_ref,
    w1_ref, b1_ref, w2_ref, b2_ref, w3_ref, b3_ref, w4_ref, b4_ref,   # encoder
    w5_ref, b5_ref, w6_ref, b6_ref, w7_ref, b7_ref, w8_ref, b8_ref,   # decoder
    out_ref, latent_ref,
    *, bf16_eltwise,
):
    def linear(h_bf16, w_ref, b_ref):
        # bf16 x bf16 on the MXU, f32 accumulation; bias add in f32 on the VPU.
        acc = jnp.dot(h_bf16, w_ref[...], preferred_element_type=jnp.float32)
        return acc + b_ref[...]

    def relu_bf16(h_f32):
        return jnp.maximum(h_f32, 0.0).astype(jnp.bfloat16)

    # f32 -> bf16 cast inside the kernel: VPU slot is free here and this avoids
    # a separate wrapper-side XLA pass over x in HBM.
    h = x_ref[...].astype(jnp.bfloat16)              # (TB, D)

    # ----- encoder -----
    h = relu_bf16(linear(h, w1_ref, b1_ref))         # (TB, 128)
    h = relu_bf16(linear(h, w2_ref, b2_ref))         # (TB, 64)
    h = relu_bf16(linear(h, w3_ref, b3_ref))         # (TB, 12)
    latent = linear(h, w4_ref, b4_ref)               # (TB, Epad) f32; cols >= E are 0
    latent_ref[...] = latent.astype(latent_ref.dtype)   # bf16 lane-dense store

    # ----- decoder (no activation on the latent before the first decoder linear) ---
    h = latent.astype(jnp.bfloat16)
    h = relu_bf16(linear(h, w5_ref, b5_ref))         # (TB, 12)
    h = relu_bf16(linear(h, w6_ref, b6_ref))         # (TB, 64)
    h = relu_bf16(linear(h, w7_ref, b7_ref))         # (TB, 128)
    h = linear(h, w8_ref, b8_ref)                    # (TB, D) f32
    if bf16_eltwise:
        # v6e / v7x: bf16-capable EUP/VPU — halves sigmoid vreg traffic.
        out_ref[...] = jax.nn.sigmoid(h.astype(jnp.bfloat16)).astype(out_ref.dtype)
    else:
        # v5e: no bf16 VPU/EUP path — keep the sigmoid in f32.
        out_ref[...] = jax.nn.sigmoid(h).astype(out_ref.dtype)


def _bf16_elementwise_ok():
    """bf16 EUP/VPU available (v6e / v7x); stay f32 elsewhere (v5e etc.)."""
    try:
        kind = jax.devices()[0].device_kind.lower()
    except Exception:
        return False
    return ("v6" in kind) or ("v7" in kind) or ("7x" in kind)


def _choose_tb(B, D, Epad, weight_bytes, *, tb_max=1024, min_steps=2):
    """Adaptive batch tile: as large as the VMEM budget allows, but keep
    >= min_steps grid steps when the batch is big enough (v7x megacore)."""
    b8 = _round_up(max(B, 1), 8)
    # Per batch row: double-buffered f32 x + f32 recon + bf16 padded latent.
    per_row = 2 * 4 * D + 2 * 4 * D + 2 * 2 * Epad
    budget = 40 * _MiB - weight_bytes
    tb_cap = max(8, (budget // per_row) // 8 * 8)
    tb_max = max(8, min(tb_max, tb_cap))
    if b8 <= 8 * min_steps:
        tb = min(b8, tb_max)                       # tiny batch: one (or few) tiles
    else:
        tb = min(tb_max, _round_up(pl.cdiv(b8, min_steps), 8))
    return max(8, tb)


def lautoencoder_forward(x, params, encoded_space_dim, *, tb=None):
    """x: [B, D] float32; params: 8 tuples of (W [in, out] f32, b [1, out] f32)."""
    B, D = x.shape
    E = encoded_space_dim
    Epad = _round_up(max(E, 1), LANE)
    bf16_eltwise = _bf16_elementwise_ok()

    # ---- kernel-side params: bf16 weights, f32 biases, lane-pad the latent dim ----
    kparams = []
    for i, (w, b) in enumerate(params):
        b = b.reshape(1, -1)
        if i == 3:   # Linear(12 -> E): zero-pad output columns to Epad
            w = jnp.pad(w, ((0, 0), (0, Epad - E)))
            b = jnp.pad(b, ((0, 0), (0, Epad - E)))
        if i == 4:   # Linear(E -> 12): zero-pad input rows to Epad
            w = jnp.pad(w, ((0, Epad - E), (0, 0)))
        kparams += [w.astype(jnp.bfloat16), b.astype(jnp.float32)]
    weight_bytes = sum(int(p.size) * p.dtype.itemsize for p in kparams)

    # ---- adaptive batch tiling; pad only if needed, keep x in f32 (cast in kernel) --
    if tb is None:
        tb = _choose_tb(B, D, Epad, weight_bytes)
    Bp = _round_up(B, tb)
    xp = x if Bp == B else jnp.pad(x, ((0, Bp - B), (0, 0)))
    grid = (Bp // tb,)

    def weight_spec(a):
        # Full-extent block, constant index_map, single-buffered: DMA'd once,
        # VMEM-resident for the whole grid (no pointless double buffering).
        return pl.BlockSpec(a.shape, lambda i: (0, 0), pipeline_mode=pl.Buffered(1))

    in_specs = [pl.BlockSpec((tb, D), lambda i: (i, 0))] + [
        weight_spec(p) for p in kparams
    ]
    out_shapes = (
        jax.ShapeDtypeStruct((Bp, D), jnp.float32),      # reconstruction (module dtype)
        jax.ShapeDtypeStruct((Bp, Epad), jnp.bfloat16),  # lane-padded latent (light HBM)
    )
    out_specs = (
        pl.BlockSpec((tb, D), lambda i: (i, 0)),
        pl.BlockSpec((tb, Epad), lambda i: (i, 0)),
    )

    # ---- VMEM limit: streaming tiles (double-buffered) + resident weights ----
    stream_bytes = tb * (2 * 4 * D + 2 * 4 * D + 2 * 2 * Epad)
    vmem_limit = int(min(48 * _MiB, max(32 * _MiB, 2 * (stream_bytes + weight_bytes))))

    layer_dims = [(D, 128), (128, 64), (64, 12), (12, Epad),
                  (Epad, 12), (12, 64), (64, 128), (128, D)]
    flops = 2 * Bp * sum(fi * fo for fi, fo in layer_dims)
    bytes_accessed = Bp * D * 4 + weight_bytes + Bp * D * 4 + Bp * Epad * 2
    cost = pl.CostEstimate(
        flops=flops, transcendentals=Bp * D, bytes_accessed=bytes_accessed
    )

    kernel = functools.partial(_autoencoder_kernel, bf16_eltwise=bf16_eltwise)
    recon_p, latent_p = pl.pallas_call(
        kernel,
        out_shape=out_shapes,
        grid=grid,
        in_specs=in_specs,
        out_specs=out_specs,
        compiler_params=pltpu.CompilerParams(
            dimension_semantics=("parallel",),
            vmem_limit_bytes=vmem_limit,
        ),
        cost_estimate=cost,
    )(xp, *kparams)

    return recon_p[:B], latent_p[:B, :E].astype(jnp.float32)


def init_params(key, encoded_space_dim, fc2_input_dim):
    """PyTorch-style uniform(+-1/sqrt(fan_in)) init.

    Returns list of (W transposed to [in, out], bias [1, out]) in forward order.
    """
    D = fc2_input_dim * fc2_input_dim
    layer_dims = [
        (D, 128), (128, 64), (64, 12), (12, encoded_space_dim),           # encoder
        (encoded_space_dim, 12), (12, 64), (64, 128), (128, D),           # decoder
    ]
    params = []
    for fan_in, fan_out in layer_dims:
        key, kw, kb = jax.random.split(key, 3)
        bound = 1.0 / jnp.sqrt(float(fan_in))
        w = jax.random.uniform(kw, (fan_in, fan_out), jnp.float32, -bound, bound)
        b = jax.random.uniform(kb, (1, fan_out), jnp.float32, -bound, bound)
        params.append((w, b))
    return params


def reference_forward(x, params):
    """Pure-JAX reference using the same bf16-rounded weights, f32 activations."""
    h = x
    latent = None
    for i, (w, b) in enumerate(params):
        wq = w.astype(jnp.bfloat16).astype(jnp.float32)
        h = h @ wq + b.reshape(1, -1)
        if i == 3:
            latent = h                      # no activation on encoder output
        elif i == 7:
            h = jax.nn.sigmoid(h)
        else:
            h = jnp.maximum(h, 0.0)
    return h, latent


if __name__ == "__main__":
    encoded_space_dim = 8
    fc2_input_dim = 16          # flattened input dim = 16*16 = 256
    batch = 8

    key = jax.random.PRNGKey(0)
    key, kx = jax.random.split(key)
    x = jax.random.uniform(
        kx, (batch, fc2_input_dim * fc2_input_dim), jnp.float32
    )
    params = init_params(jax.random.PRNGKey(0), encoded_space_dim, fc2_input_dim)

    fwd = jax.jit(
        functools.partial(lautoencoder_forward, encoded_space_dim=encoded_space_dim)
    )
    recon, latent = fwd(x, params)
    recon, latent = jax.block_until_ready((recon, latent))

    # sanity check against a pure-JAX reference (bf16 weights, f32 activations);
    # tolerances account for bf16 inter-layer / sigmoid / latent-store rounding.
    ref_recon, ref_latent = reference_forward(x, params)
    assert recon.shape == (batch, fc2_input_dim * fc2_input_dim)
    assert latent.shape == (batch, encoded_space_dim)
    assert jnp.allclose(recon, ref_recon, atol=3e-2, rtol=3e-2)
    assert jnp.allclose(latent, ref_latent, atol=3e-2, rtol=3e-2)

    print("KERNEL_OK")
</pallas_src>

<mosaic_0001>
module attributes {stable_mosaic.version = 11 : i64} {
  func.func @_autoencoder_kernel(%arg0: i32, %arg1: memref<8x256xf32, #tpu.memory_space<vmem>>, %arg2: memref<256x128xbf16, #tpu.memory_space<vmem>>, %arg3: memref<1x128xf32, #tpu.memory_space<vmem>>, %arg4: memref<128x64xbf16, #tpu.memory_space<vmem>>, %arg5: memref<1x64xf32, #tpu.memory_space<vmem>>, %arg6: memref<64x12xbf16, #tpu.memory_space<vmem>>, %arg7: memref<1x12xf32, #tpu.memory_space<vmem>>, %arg8: memref<12x128xbf16, #tpu.memory_space<vmem>>, %arg9: memref<1x128xf32, #tpu.memory_space<vmem>>, %arg10: memref<128x12xbf16, #tpu.memory_space<vmem>>, %arg11: memref<1x12xf32, #tpu.memory_space<vmem>>, %arg12: memref<12x64xbf16, #tpu.memory_space<vmem>>, %arg13: memref<1x64xf32, #tpu.memory_space<vmem>>, %arg14: memref<64x128xbf16, #tpu.memory_space<vmem>>, %arg15: memref<1x128xf32, #tpu.memory_space<vmem>>, %arg16: memref<128x256xbf16, #tpu.memory_space<vmem>>, %arg17: memref<1x256xf32, #tpu.memory_space<vmem>>, %arg18: memref<8x256xf32, #tpu.memory_space<vmem>>, %arg19: memref<8x128xbf16, #tpu.memory_space<vmem>>) attributes {dimension_semantics = [#tpu.dimension_semantics<parallel>], iteration_bounds = array<i64: 1>, scalar_prefetch = 0 : i64, scratch_operands = 0 : i64, tpu.core_type = #tpu.core_type<tc>, window_params = [{transform_indices = @transform_0, window_bounds = array<i64: 8, 256>}, {pipeline_mode = #tpu.pipeline_mode<synchronous>, transform_indices = @transform_1, window_bounds = array<i64: 256, 128>}, {pipeline_mode = #tpu.pipeline_mode<synchronous>, transform_indices = @transform_2, window_bounds = array<i64: 1, 128>}, {pipeline_mode = #tpu.pipeline_mode<synchronous>, transform_indices = @transform_3, window_bounds = array<i64: 128, 64>}, {pipeline_mode = #tpu.pipeline_mode<synchronous>, transform_indices = @transform_4, window_bounds = array<i64: 1, 64>}, {pipeline_mode = #tpu.pipeline_mode<synchronous>, transform_indices = @transform_5, window_bounds = array<i64: 64, 12>}, {pipeline_mode = #tpu.pipeline_mode<synchronous>, transform_indices = @transform_6, window_bounds = array<i64: 1, 12>}, {pipeline_mode = #tpu.pipeline_mode<synchronous>, transform_indices = @transform_7, window_bounds = array<i64: 12, 128>}, {pipeline_mode = #tpu.pipeline_mode<synchronous>, transform_indices = @transform_8, window_bounds = array<i64: 1, 128>}, {pipeline_mode = #tpu.pipeline_mode<synchronous>, transform_indices = @transform_9, window_bounds = array<i64: 128, 12>}, {pipeline_mode = #tpu.pipeline_mode<synchronous>, transform_indices = @transform_10, window_bounds = array<i64: 1, 12>}, {pipeline_mode = #tpu.pipeline_mode<synchronous>, transform_indices = @transform_11, window_bounds = array<i64: 12, 64>}, {pipeline_mode = #tpu.pipeline_mode<synchronous>, transform_indices = @transform_12, window_bounds = array<i64: 1, 64>}, {pipeline_mode = #tpu.pipeline_mode<synchronous>, transform_indices = @transform_13, window_bounds = array<i64: 64, 128>}, {pipeline_mode = #tpu.pipeline_mode<synchronous>, transform_indices = @transform_14, window_bounds = array<i64: 1, 128>}, {pipeline_mode = #tpu.pipeline_mode<synchronous>, transform_indices = @transform_15, window_bounds = array<i64: 128, 256>}, {pipeline_mode = #tpu.pipeline_mode<synchronous>, transform_indices = @transform_16, window_bounds = array<i64: 1, 256>}, {transform_indices = @transform_17, window_bounds = array<i64: 8, 256>}, {transform_indices = @transform_18, window_bounds = array<i64: 8, 128>}]} {
    %c0 = arith.constant 0 : index
    %c0_0 = arith.constant 0 : index
    %0 = vector.load %arg1[%c0, %c0_0] : memref<8x256xf32, #tpu.memory_space<vmem>>, vector<8x256xf32>
    %1 = arith.truncf %0 : vector<8x256xf32> to vector<8x256xbf16>
    %c0_1 = arith.constant 0 : index
    %c0_2 = arith.constant 0 : index
    %2 = vector.load %arg2[%c0_1, %c0_2] : memref<256x128xbf16, #tpu.memory_space<vmem>>, vector<256x128xbf16>
    %cst = arith.constant dense<0.000000e+00> : vector<8x128xf32>
    %3 = tpu.matmul %1, %2, %cst {dimension_numbers = #tpu.dot_dimension_numbers<[1], [0], [0], [1], [0, 0, 1, 1], [], []>} : vector<8x256xbf16>, vector<256x128xbf16>, vector<8x128xf32> -> vector<8x128xf32>
    %c0_3 = arith.constant 0 : index
    %c0_4 = arith.constant 0 : index
    %4 = vector.load %arg3[%c0_3, %c0_4] : memref<1x128xf32, #tpu.memory_space<vmem>>, vector<1x128xf32>
    %5 = vector.broadcast %4 : vector<1x128xf32> to vector<8x128xf32>
    %6 = arith.addf %3, %5 : vector<8x128xf32>
    %cst_5 = arith.constant 0.000000e+00 : f32
    %7 = vector.broadcast %cst_5 : f32 to vector<8x128xf32>
    %8 = arith.maximumf %6, %7 : vector<8x128xf32>
    %9 = arith.truncf %8 : vector<8x128xf32> to vector<8x128xbf16>
    %c0_6 = arith.constant 0 : index
    %c0_7 = arith.constant 0 : index
    %10 = vector.load %arg4[%c0_6, %c0_7] : memref<128x64xbf16, #tpu.memory_space<vmem>>, vector<128x64xbf16>
    %cst_8 = arith.constant dense<0.000000e+00> : vector<8x64xf32>
    %11 = tpu.matmul %9, %10, %cst_8 {dimension_numbers = #tpu.dot_dimension_numbers<[1], [0], [0], [1], [0, 0, 1, 1], [], []>} : vector<8x128xbf16>, vector<128x64xbf16>, vector<8x64xf32> -> vector<8x64xf32>
    %c0_9 = arith.constant 0 : index
    %c0_10 = arith.constant 0 : index
    %12 = vector.load %arg5[%c0_9, %c0_10] : memref<1x64xf32, #tpu.memory_space<vmem>>, vector<1x64xf32>
    %13 = vector.broadcast %12 : vector<1x64xf32> to vector<8x64xf32>
    %14 = arith.addf %11, %13 : vector<8x64xf32>
    %cst_11 = arith.constant 0.000000e+00 : f32
    %15 = vector.broadcast %cst_11 : f32 to vector<8x64xf32>
    %16 = arith.maximumf %14, %15 : vector<8x64xf32>
    %17 = arith.truncf %16 : vector<8x64xf32> to vector<8x64xbf16>
    %c0_12 = arith.constant 0 : index
    %c0_13 = arith.constant 0 : index
    %18 = vector.load %arg6[%c0_12, %c0_13] : memref<64x12xbf16, #tpu.memory_space<vmem>>, vector<64x12xbf16>
    %cst_14 = arith.constant dense<0.000000e+00> : vector<8x12xf32>
    %19 = tpu.matmul %17, %18, %cst_14 {dimension_numbers = #tpu.dot_dimension_numbers<[1], [0], [0], [1], [0, 0, 1, 1], [], []>} : vector<8x64xbf16>, vector<64x12xbf16>, vector<8x12xf32> -> vector<8x12xf32>
    %c0_15 = arith.constant 0 : index
    %c0_16 = arith.constant 0 : index
    %20 = vector.load %arg7[%c0_15, %c0_16] : memref<1x12xf32, #tpu.memory_space<vmem>>, vector<1x12xf32>
    %21 = vector.broadcast %20 : vector<1x12xf32> to vector<8x12xf32>
    %22 = arith.addf %19, %21 : vector<8x12xf32>
    %cst_17 = arith.constant 0.000000e+00 : f32
    %23 = vector.broadcast %cst_17 : f32 to vector<8x12xf32>
    %24 = arith.maximumf %22, %23 : vector<8x12xf32>
    %25 = arith.truncf %24 : vector<8x12xf32> to vector<8x12xbf16>
    %c0_18 = arith.constant 0 : index
    %c0_19 = arith.constant 0 : index
    %26 = vector.load %arg8[%c0_18, %c0_19] : memref<12x128xbf16, #tpu.memory_space<vmem>>, vector<12x128xbf16>
    %cst_20 = arith.constant dense<0.000000e+00> : vector<8x128xf32>
    %27 = tpu.matmul %25, %26, %cst_20 {dimension_numbers = #tpu.dot_dimension_numbers<[1], [0], [0], [1], [0, 0, 1, 1], [], []>} : vector<8x12xbf16>, vector<12x128xbf16>, vector<8x128xf32> -> vector<8x128xf32>
    %c0_21 = arith.constant 0 : index
    %c0_22 = arith.constant 0 : index
    %28 = vector.load %arg9[%c0_21, %c0_22] : memref<1x128xf32, #tpu.memory_space<vmem>>, vector<1x128xf32>
    %29 = vector.broadcast %28 : vector<1x128xf32> to vector<8x128xf32>
    %30 = arith.addf %27, %29 : vector<8x128xf32>
    %31 = arith.truncf %30 : vector<8x128xf32> to vector<8x128xbf16>
    %c0_23 = arith.constant 0 : index
    %c0_24 = arith.constant 0 : index
    %32 = vector.load %arg19[%c0_23, %c0_24] : memref<8x128xbf16, #tpu.memory_space<vmem>>, vector<8x128xbf16>
    tpu.vector_store %arg19[%c0_23, %c0_24], %31 {strides = array<i32>} : memref<8x128xbf16, #tpu.memory_space<vmem>>, vector<8x128xbf16>,
    %33 = arith.truncf %30 : vector<8x128xf32> to vector<8x128xbf16>
    %c0_25 = arith.constant 0 : index
    %c0_26 = arith.constant 0 : index
    %34 = vector.load %arg10[%c0_25, %c0_26] : memref<128x12xbf16, #tpu.memory_space<vmem>>, vector<128x12xbf16>
    %cst_27 = arith.constant dense<0.000000e+00> : vector<8x12xf32>
    %35 = tpu.matmul %33, %34, %cst_27 {dimension_numbers = #tpu.dot_dimension_numbers<[1], [0], [0], [1], [0, 0, 1, 1], [], []>} : vector<8x128xbf16>, vector<128x12xbf16>, vector<8x12xf32> -> vector<8x12xf32>
    %c0_28 = arith.constant 0 : index
    %c0_29 = arith.constant 0 : index
    %36 = vector.load %arg11[%c0_28, %c0_29] : memref<1x12xf32, #tpu.memory_space<vmem>>, vector<1x12xf32>
    %37 = vector.broadcast %36 : vector<1x12xf32> to vector<8x12xf32>
    %38 = arith.addf %35, %37 : vector<8x12xf32>
    %cst_30 = arith.constant 0.000000e+00 : f32
    %39 = vector.broadcast %cst_30 : f32 to vector<8x12xf32>
    %40 = arith.maximumf %38, %39 : vector<8x12xf32>
    %41 = arith.truncf %40 : vector<8x12xf32> to vector<8x12xbf16>
    %c0_31 = arith.constant 0 : index
    %c0_32 = arith.constant 0 : index
    %42 = vector.load %arg12[%c0_31, %c0_32] : memref<12x64xbf16, #tpu.memory_space<vmem>>, vector<12x64xbf16>
    %cst_33 = arith.constant dense<0.000000e+00> : vector<8x64xf32>
    %43 = tpu.matmul %41, %42, %cst_33 {dimension_numbers = #tpu.dot_dimension_numbers<[1], [0], [0], [1], [0, 0, 1, 1], [], []>} : vector<8x12xbf16>, vector<12x64xbf16>, vector<8x64xf32> -> vector<8x64xf32>
    %c0_34 = arith.constant 0 : index
    %c0_35 = arith.constant 0 : index
    %44 = vector.load %arg13[%c0_34, %c0_35] : memref<1x64xf32, #tpu.memory_space<vmem>>, vector<1x64xf32>
    %45 = vector.broadcast %44 : vector<1x64xf32> to vector<8x64xf32>
    %46 = arith.addf %43, %45 : vector<8x64xf32>
    %cst_36 = arith.constant 0.000000e+00 : f32
    %47 = vector.broadcast %cst_36 : f32 to vector<8x64xf32>
    %48 = arith.maximumf %46, %47 : vector<8x64xf32>
    %49 = arith.truncf %48 : vector<8x64xf32> to vector<8x64xbf16>
    %c0_37 = arith.constant 0 : index
    %c0_38 = arith.constant 0 : index
    %50 = vector.load %arg14[%c0_37, %c0_38] : memref<64x128xbf16, #tpu.memory_space<vmem>>, vector<64x128xbf16>
    %cst_39 = arith.constant dense<0.000000e+00> : vector<8x128xf32>
    %51 = tpu.matmul %49, %50, %cst_39 {dimension_numbers = #tpu.dot_dimension_numbers<[1], [0], [0], [1], [0, 0, 1, 1], [], []>} : vector<8x64xbf16>, vector<64x128xbf16>, vector<8x128xf32> -> vector<8x128xf32>
    %c0_40 = arith.constant 0 : index
    %c0_41 = arith.constant 0 : index
    %52 = vector.load %arg15[%c0_40, %c0_41] : memref<1x128xf32, #tpu.memory_space<vmem>>, vector<1x128xf32>
    %53 = vector.broadcast %52 : vector<1x128xf32> to vector<8x128xf32>
    %54 = arith.addf %51, %53 : vector<8x128xf32>
    %cst_42 = arith.constant 0.000000e+00 : f32
    %55 = vector.broadcast %cst_42 : f32 to vector<8x128xf32>
    %56 = arith.maximumf %54, %55 : vector<8x128xf32>
    %57 = arith.truncf %56 : vector<8x128xf32> to vector<8x128xbf16>
    %c0_43 = arith.constant 0 : index
    %c0_44 = arith.constant 0 : index
    %58 = vector.load %arg16[%c0_43, %c0_44] : memref<128x256xbf16, #tpu.memory_space<vmem>>, vector<128x256xbf16>
    %cst_45 = arith.constant dense<0.000000e+00> : vector<8x256xf32>
    %59 = tpu.matmul %57, %58, %cst_45 {dimension_numbers = #tpu.dot_dimension_numbers<[1], [0], [0], [1], [0, 0, 1, 1], [], []>} : vector<8x128xbf16>, vector<128x256xbf16>, vector<8x256xf32> -> vector<8x256xf32>
    %c0_46 = arith.constant 0 : index
    %c0_47 = arith.constant 0 : index
    %60 = vector.load %arg17[%c0_46, %c0_47] : memref<1x256xf32, #tpu.memory_space<vmem>>, vector<1x256xf32>
    %61 = vector.broadcast %60 : vector<1x256xf32> to vector<8x256xf32>
    %62 = arith.addf %59, %61 : vector<8x256xf32>
    %63 = arith.negf %62 : vector<8x256xf32>
    %64 = math.exp %63 : vector<8x256xf32>
    %cst_48 = arith.constant 1.000000e+00 : f32
    %65 = vector.broadcast %cst_48 : f32 to vector<8x256xf32>
    %66 = arith.addf %65, %64 : vector<8x256xf32>
    %67 = arith.divf %65, %66 : vector<8x256xf32>
    %c0_49 = arith.constant 0 : index
    %c0_50 = arith.constant 0 : index
    %68 = vector.load %arg18[%c0_49, %c0_50] : memref<8x256xf32, #tpu.memory_space<vmem>>, vector<8x256xf32>
    tpu.vector_store %arg18[%c0_49, %c0_50], %67 {strides = array<i32>} : memref<8x256xf32, #tpu.memory_space<vmem>>, vector<8x256xf32>,
    return
  }
  func.func @transform_0(%arg0: i32) -> (i32, i32) {
    %c0_i32 = arith.constant 0 : i32
    %c0_i32_0 = arith.constant 0 : i32
    return %arg0, %c0_i32 : i32, i32
  }
  func.func @transform_1(%arg0: i32) -> (i32, i32) {
    %c0_i32 = arith.constant 0 : i32
    %c0_i32_0 = arith.constant 0 : i32
    %c0_i32_1 = arith.constant 0 : i32
    return %c0_i32, %c0_i32_0 : i32, i32
  }
  func.func @transform_2(%arg0: i32) -> (i32, i32) {
    %c0_i32 = arith.constant 0 : i32
    %c0_i32_0 = arith.constant 0 : i32
    %c0_i32_1 = arith.constant 0 : i32
    return %c0_i32, %c0_i32_0 : i32, i32
  }
  func.func @transform_3(%arg0: i32) -> (i32, i32) {
    %c0_i32 = arith.constant 0 : i32
    %c0_i32_0 = arith.constant 0 : i32
    %c0_i32_1 = arith.constant 0 : i32
    return %c0_i32, %c0_i32_0 : i32, i32
  }
  func.func @transform_4(%arg0: i32) -> (i32, i32) {
    %c0_i32 = arith.constant 0 : i32
    %c0_i32_0 = arith.constant 0 : i32
    %c0_i32_1 = arith.constant 0 : i32
    return %c0_i32, %c0_i32_0 : i32, i32
  }
  func.func @transform_5(%arg0: i32) -> (i32, i32) {
    %c0_i32 = arith.constant 0 : i32
    %c0_i32_0 = arith.constant 0 : i32
    %c0_i32_1 = arith.constant 0 : i32
    return %c0_i32, %c0_i32_0 : i32, i32
  }
  func.func @transform_6(%arg0: i32) -> (i32, i32) {
    %c0_i32 = arith.constant 0 : i32
    %c0_i32_0 = arith.constant 0 : i32
    %c0_i32_1 = arith.constant 0 : i32
    return %c0_i32, %c0_i32_0 : i32, i32
  }
  func.func @transform_7(%arg0: i32) -> (i32, i32) {
    %c0_i32 = arith.constant 0 : i32
    %c0_i32_0 = arith.constant 0 : i32
    %c0_i32_1 = arith.constant 0 : i32
    return %c0_i32, %c0_i32_0 : i32, i32
  }
  func.func @transform_8(%arg0: i32) -> (i32, i32) {
    %c0_i32 = arith.constant 0 : i32
    %c0_i32_0 = arith.constant 0 : i32
    %c0_i32_1 = arith.constant 0 : i32
    return %c0_i32, %c0_i32_0 : i32, i32
  }
  func.func @transform_9(%arg0: i32) -> (i32, i32) {
    %c0_i32 = arith.constant 0 : i32
    %c0_i32_0 = arith.constant 0 : i32
    %c0_i32_1 = arith.constant 0 : i32
    return %c0_i32, %c0_i32_0 : i32, i32
  }
  func.func @transform_10(%arg0: i32) -> (i32, i32) {
    %c0_i32 = arith.constant 0 : i32
    %c0_i32_0 = arith.constant 0 : i32
    %c0_i32_1 = arith.constant 0 : i32
    return %c0_i32, %c0_i32_0 : i32, i32
  }
  func.func @transform_11(%arg0: i32) -> (i32, i32) {
    %c0_i32 = arith.constant 0 : i32
    %c0_i32_0 = arith.constant 0 : i32
    %c0_i32_1 = arith.constant 0 : i32
    return %c0_i32, %c0_i32_0 : i32, i32
  }
  func.func @transform_12(%arg0: i32) -> (i32, i32) {
    %c0_i32 = arith.constant 0 : i32
    %c0_i32_0 = arith.constant 0 : i32
    %c0_i32_1 = arith.constant 0 : i32
    return %c0_i32, %c0_i32_0 : i32, i32
  }
  func.func @transform_13(%arg0: i32) -> (i32, i32) {
    %c0_i32 = arith.constant 0 : i32
    %c0_i32_0 = arith.constant 0 : i32
    %c0_i32_1 = arith.constant 0 : i32
    return %c0_i32, %c0_i32_0 : i32, i32
  }
  func.func @transform_14(%arg0: i32) -> (i32, i32) {
    %c0_i32 = arith.constant 0 : i32
    %c0_i32_0 = arith.constant 0 : i32
    %c0_i32_1 = arith.constant 0 : i32
    return %c0_i32, %c0_i32_0 : i32, i32
  }
  func.func @transform_15(%arg0: i32) -> (i32, i32) {
    %c0_i32 = arith.constant 0 : i32
    %c0_i32_0 = arith.constant 0 : i32
    %c0_i32_1 = arith.constant 0 : i32
    return %c0_i32, %c0_i32_0 : i32, i32
  }
  func.func @transform_16(%arg0: i32) -> (i32, i32) {
    %c0_i32 = arith.constant 0 : i32
    %c0_i32_0 = arith.constant 0 : i32
    %c0_i32_1 = arith.constant 0 : i32
    return %c0_i32, %c0_i32_0 : i32, i32
  }
  func.func @transform_17(%arg0: i32) -> (i32, i32) {
    %c0_i32 = arith.constant 0 : i32
    %c0_i32_0 = arith.constant 0 : i32
    return %arg0, %c0_i32 : i32, i32
  }
  func.func @transform_18(%arg0: i32) -> (i32, i32) {
    %c0_i32 = arith.constant 0 : i32
    %c0_i32_0 = arith.constant 0 : i32
    return %arg0, %c0_i32 : i32, i32
  }
}

</mosaic_0001>

<bundles_post_ra>
// kernel: lautoencoder_forward.1
= control target key start
LH: loop header
LB: loop body
LE: loop exit
PB: predicated region body
PF: predicated region fallthrough
CT: control target
= control target key end

     0   :  { %s1608_s0 = inlined_call_operand.vmem [shape: f32[8,256], index: 0, kind: input, shape index: {}]   ;;  %s1609_s1 = inlined_call_operand.vmem [shape: bf16[256,128], index: 1, kind: input, shape index: {}]   ;;  %s1610_s2 = inlined_call_operand.vmem [shape: f32[1,128], index: 2, kind: input, shape index: {}]   ;;  %s1611_s3 = inlined_call_operand.vmem [shape: bf16[128,64], index: 3, kind: input, shape index: {}]   ;;  %s1612_s4 = inlined_call_operand.vmem [shape: f32[1,64], index: 4, kind: input, shape index: {}]   ;;  %s1613_s5 = inlined_call_operand.vmem [shape: bf16[64,12], index: 5, kind: input, shape index: {}]   ;;  %s1614_s6 = inlined_call_operand.vmem [shape: f32[1,12], index: 6, kind: input, shape index: {}]   ;;  %s1615_s7 = inlined_call_operand.vmem [shape: bf16[12,128], index: 7, kind: input, shape index: {}]   ;;  %s1616_s8 = inlined_call_operand.vmem [shape: f32[1,128], index: 8, kind: input, shape index: {}]   ;;  %s1617_s9 = inlined_call_operand.vmem [shape: bf16[128,12], index: 9, kind: input, shape index: {}]   ;;  %s1618_s10 = inlined_call_operand.vmem [shape: f32[1,12], index: 10, kind: input, shape index: {}]   ;;  %s1619_s11 = inlined_call_operand.vmem [shape: bf16[12,64], index: 11, kind: input, shape index: {}]   ;;  %s1620_s12 = inlined_call_operand.vmem [shape: f32[1,64], index: 12, kind: input, shape index: {}]   ;;  %s1621_s13 = inlined_call_operand.vmem [shape: bf16[64,128], index: 13, kind: input, shape index: {}]   ;;  %s1622_s14 = inlined_call_operand.vmem [shape: f32[1,128], index: 14, kind: input, shape index: {}]   ;;  %s1623_s15 = inlined_call_operand.vmem [shape: bf16[128,256], index: 15, kind: input, shape index: {}]   ;;  %s1624_s16 = inlined_call_operand.vmem [shape: f32[1,256], index: 16, kind: input, shape index: {}]   ;;  %s1625_s17 = inlined_call_operand.hbm [shape: f32[8,256], index: 17, kind: output, shape index: {0}]   ;;  %s1626_s18 = inlined_call_operand.vmem [shape: bf16[8,128], index: 18, kind: output, shape index: {1}]  }
   0x1   :  { %1629 = sst [smem:[#allocation5_spill]] %s1608_s0 }
   0x2   :  { %1630 = sst [smem:[#allocation6_spill]] %s1609_s1 }
   0x3   :  { %1631 = sst [smem:[#allocation7_spill]] %s1610_s2 }
   0x4   :  { %s1632_s29 = sld [smem:[#allocation6_spill]]  ;;  %v1246_v2 = vmov 0.0   ;;  %s1633_s23 = sld [smem:[#allocation5_spill]]  ;;  %v1164_v14 = vld [vmem:[%s1611_s3] sm:$0xff]   ;;  %v1165_v17 = vld [vmem:[%s1611_s3 + $0x8] sm:$0xff]   ;;  %v1166_v20 = vld [vmem:[%s1611_s3 + $0x10] sm:$0xff]  }
   0x5   :  { %1068 = vmatprep.subr.bf16.mxu1 %v1246_v2  ;;  %v1167_v23 = vld [vmem:[%s1611_s3 + $0x18] sm:$0xff]   ;;  %v1168_v25 = vld [vmem:[%s1611_s3 + $0x20] sm:$0xff]   ;;  %v1169_v26 = vld [vmem:[%s1611_s3 + $0x28] sm:$0xff]  }
   0x6   :  { %1069 = vmatpush3.bf16.msra.mxu1 %v1164_v14 }
   0x7   :  { %1070 = vmatprep.subr.bf16.mxu1 %v1246_v2 }
   0xa   :  { %v1148_v0 = vld [vmem:[%s1632_s29 + $0x40] sm:$0xff]   ;;  %v1150_v3 = vld [vmem:[%s1632_s29 + $0x48] sm:$0xff]   ;;  %v1152_v5 = vld [vmem:[%s1632_s29 + $0x50] sm:$0xff]   ;;  %1071 = vmatpush3.bf16.msra.mxu1 %v1165_v17 }
   0xb   :  { %v1149_v1 = vld [vmem:[%s1632_s29] sm:$0xff]   ;;  %1014 = vmatprep.subr.bf16.mxu0 %v1148_v0  ;;  %v1151_v4 = vld [vmem:[%s1632_s29 + $0x8] sm:$0xff]   ;;  %v1153_v6 = vld [vmem:[%s1632_s29 + $0x10] sm:$0xff]   ;;  %1072 = vmatprep.subr.bf16.mxu1 %v1246_v2 }
   0xc   :  { %1015 = vmatpush3.bf16.msra.mxu0 %v1149_v1  ;;  %v1154_v7 = vld [vmem:[%s1632_s29 + $0x58] sm:$0xff]   ;;  %v1156_v9 = vld [vmem:[%s1632_s29 + $0x60] sm:$0xff]   ;;  %v1158_v11 = vld [vmem:[%s1632_s29 + $0x68] sm:$0xff]  }
   0xd   :  { %1016 = vmatprep.subr.bf16.mxu0 %v1150_v3  ;;  %v1155_v8 = vld [vmem:[%s1632_s29 + $0x18] sm:$0xff]   ;;  %v1157_v10 = vld [vmem:[%s1632_s29 + $0x20] sm:$0xff]   ;;  %v61_v12 = vld [vmem:[%s1633_s23 + $0x8] sm:$0xff] }
   0xe   :  { %v63_v13 = vpack.c.bf16 %v61_v12, %v61_v12  ;;  %v1159_v15 = vld [vmem:[%s1632_s29 + $0x28] sm:$0xff]   ;;  %v1160_v16 = vld [vmem:[%s1632_s29 + $0x70] sm:$0xff]   ;;  %v1162_v19 = vld [vmem:[%s1632_s29 + $0x78] sm:$0xff]   ;;  %1073 = vmatpush3.bf16.msra.mxu1 %v1166_v20 }
   0xf   :  { %v1161_v18 = vld [vmem:[%s1632_s29 + $0x30] sm:$0xff]   ;;  %v1163_v21 = vld [vmem:[%s1632_s29 + $0x38] sm:$0xff]   ;;  %v60_v22 = vld [vmem:[%s1633_s23] sm:$0xff]  ;;  %1074 = vmatprep.subr.bf16.mxu1 %v1246_v2 }
  0x10   :  { %1017 = vmatpush3.bf16.msra.mxu0 %v1151_v4  ;;  %231 = vmatprep.mubr.bf16.mxu0 %v63_v13  ;;  %v62_v24 = vpack.c.bf16 %v60_v22, %v60_v22 }
  0x11   :  { %1018 = vmatprep.subr.bf16.mxu0 %v1152_v5 }
  0x12   :  { %1075 = vmatpush3.bf16.msra.mxu1 %v1167_v23 }
  0x13   :  { %1076 = vmatprep.subr.bf16.mxu1 %v1246_v2 }
  0x14   :  { %1019 = vmatpush3.bf16.msra.mxu0 %v1153_v6 }
  0x15   :  { %1020 = vmatprep.subr.bf16.mxu0 %v1154_v7 }
  0x16   :  { %1077 = vmatpush3.bf16.msra.mxu1 %v1168_v25 }
  0x17   :  { %1078 = vmatprep.subr.bf16.mxu1 %v1246_v2 }
  0x18   :  { %1021 = vmatpush3.bf16.msra.mxu0 %v1155_v8 }
  0x19   :  { %1022 = vmatprep.subr.bf16.mxu0 %v1156_v9 }
  0x1a   :  { %1079 = vmatpush3.bf16.msra.mxu1 %v1169_v26 }
  0x1b   :  { %1080 = vmatprep.subr.bf16.mxu1 %v1246_v2 }
  0x1c   :  { %1023 = vmatpush3.bf16.msra.mxu0 %v1157_v10 }
  0x1d   :  { %1024 = vmatprep.subr.bf16.mxu0 %v1158_v11 }
  0x20   :  { %1025 = vmatpush3.bf16.msra.mxu0 %v1159_v15 }
  0x21   :  { %1026 = vmatprep.subr.bf16.mxu0 %v1160_v16 }
  0x24   :  { %1027 = vmatpush3.bf16.msra.mxu0 %v1161_v18 }
  0x25   :  { %1028 = vmatprep.subr.bf16.mxu0 %v1162_v19 }
  0x28   :  { %1029 = vmatpush3.bf16.msra.mxu0 %v1163_v21 }
  0x29   :  { %1126 = vmatprep.subr.bf16.mxu0 %v1246_v2 }
  0x2b   :  { %232 = vmatmul.mubr.bf16.vlgmr.msra.gmra.mrb[0].mxu0 %v62_v24 }
  0x2c   :  { %24 = vsyncpa [#allocation3], 0  ;;  %v1170_v27 = vld [vmem:[%s1611_s3 + $0x30] sm:$0xff]   ;;  %v1171_v28 = vld [vmem:[%s1611_s3 + $0x38] sm:$0xff]   ;;  %vm1247_vm0 = vmmov 0   ;;  %s1634_s26 = sld [smem:[#allocation7_spill]] }
  0x2d   :  { %1081 = vmatpush3.bf16.msra.mxu1 %v1170_v27  ;;  %1084 = vmatprep.mubr.msk.bf16.mxu1 %vm1247_vm0, %v1246_v2  ;;  %v1172_v37 = vld [vmem:[%s1613_s5] sm:$0xff]   ;;  %v1173_v39 = vld [vmem:[%s1613_s5 + $0x8] sm:$0xff]   ;;  %v1174_v40 = vld [vmem:[%s1613_s5 + $0x10] sm:$0xff]   ;;  %vm457_vm1 = vcmask 1045504   ;;  %vm393_vm2 = vcmask 523264   ;;  %vm453_vm3 = vcmask 97280  }
  0x2e   :  { %1082 = vmatprep.subr.bf16.mxu1 %v1246_v2  ;;  %1128 = vmatprep.mubr.msk.bf16.mxu0 %vm1247_vm0, %v1246_v2  ;;  %v1175_v41 = vld [vmem:[%s1613_s5 + $0x18] sm:$0xff]   ;;  %v960_v42 = vld [vmem:[%s1612_s4] ss:$0 sm:$0xff]  ;;  %v1178_v61 = vld [vmem:[%s1617_s9 + $0x8] sm:$0xff]  }
  0x2f   :  { %v1176_v46 = vld [vmem:[%s1615_s7] sm:$0x3f]   ;;  %v1179_v62 = vld [vmem:[%s1617_s9 + $0x10] sm:$0xff]   ;;  %v1180_v63 = vld [vmem:[%s1617_s9 + $0x18] sm:$0xff]  }
  0x30   :  { %v459_v51 = vsel %vm457_vm1, %v1176_v46, 0  ;;  %v969_v52 = vld [vmem:[%s1614_s6] ss:$0 sm:$0xff]  ;;  %v1182_v1 = vld [vmem:[%s1617_s9 + $0x28] sm:$0xff]   ;;  %v1183_v3 = vld [vmem:[%s1617_s9 + $0x30] sm:$0xff]  }
  0x31   :  { %1083 = vmatpush3.bf16.msra.mxu1 %v1171_v28  ;;  %v1177_v59 = vld [vmem:[%s1617_s9] sm:$0xff]   ;;  %v1184_v4 = vld [vmem:[%s1617_s9 + $0x38] sm:$0xff]   ;;  %v1187_v23 = vld [vmem:[%s1621_s13 + $0x8] sm:$0xff]  }
  0x32   :  { %1088 = vmatprep.subr.bf16.mxu1 %v1246_v2  ;;  %v943_v30 = vld [vmem:[%s1634_s26] ss:$0 sm:$0xff]  ;;  %v1188_v24 = vld [vmem:[%s1621_s13 + $0x10] sm:$0xff]   ;;  %v1189_v25 = vld [vmem:[%s1621_s13 + $0x18] sm:$0xff]  }
  0x33   :  { %v1181_v0 = vld [vmem:[%s1617_s9 + $0x20] sm:$0xff]  }
  0x34   :  { %v1185_v5 = vld [vmem:[%s1619_s11] sm:$0x3f]  }
  0x35   :  { %v634_v6 = vsel %vm457_vm1, %v1185_v5, 0  ;;  %v975_v7 = vld [vmem:[%s1616_s8] ss:$0 sm:$0xff]  ;;  %v1192_v26 = vld [vmem:[%s1623_s15 + $0x4] ss:$8 sps:$4 sm:$0xff]  }
  0x36   :  { %1127 = vmatpush3.bf16.msra.mxu0 %v634_v6  ;;  %v978_v14 = vld [vmem:[%s1618_s10] ss:$0 sm:$0xff] }
  0x37   :  { %1132 = vmatprep.subr.bf16.mxu0 %v1246_v2  ;;  %v1186_v21 = vld [vmem:[%s1621_s13] sm:$0xff]  }
  0x38   :  { %v987_v27 = vld [vmem:[%s1620_s12] ss:$0 sm:$0xff] }
  0x39   :  { %v1208_v46 = vld [vmem:[%s1623_s15 + $0x60] ss:$8 sps:$4 sm:$0xff]  }
  0xfe   :  { %v1030_v29 = vpop.f32.mrb[0].mxu0 }
  0xff   :  { %v1031_v31 = vpop.f32.mrb[1].mxu0 }
 0x100   :  { %v1032_v32 = vadd.f32 %v1031_v31, %v1030_v29  ;;  %v1033_v33 = vpop.f32.mrb[2].mxu0 }
 0x101   :  { %v1034_v34 = vpop.f32.mrb[3].mxu0  ;;  %v1190_v33 = vld [vmem:[%s1623_s15] ss:$8 sps:$4 sm:$0xff]  }
 0x102   :  { %v234_v35 = vadd.f32 %v1032_v32, %v943_v30 }
 0x104   :  { %v239_v36 = vmax.f32 %v234_v35, 0.0  ;;  %v1195_v35 = vld [vmem:[%s1623_s15 + $0x14] ss:$8 sps:$4 sm:$0xff]  }
 0x106   :  { %v240_v38 = vpack.c.bf16 %v239_v36, %v239_v36  ;;  %v1193_v36 = vld [vmem:[%s1623_s15 + $0x10] ss:$8 sps:$4 sm:$0xff]  }
 0x108   :  { %1085 = vmatmul.mubr.bf16.vlgmr.msra.gmra.mrb[0].mxu1 %v240_v38  ;;  %v1196_v38 = vld [vmem:[%s1623_s15 + $0x20] ss:$8 sps:$4 sm:$0xff]  }
 0x109   :  { %1089 = vmatpush3.bf16.msra.mxu1 %v1172_v37  ;;  %1096 = vmatprep.mubr.msk.bf16.mxu1 %vm1247_vm0, %v1246_v2  ;;  %v1198_v37 = vld [vmem:[%s1623_s15 + $0x24] ss:$8 sps:$4 sm:$0xff]  }
 0x10a   :  { %1090 = vmatprep.subr.bf16.mxu1 %v1246_v2 }
 0x10d   :  { %1091 = vmatpush3.bf16.msra.mxu1 %v1173_v39  ;;  %v1201_v39 = vld [vmem:[%s1623_s15 + $0x34] ss:$8 sps:$4 sm:$0xff]  }
 0x10e   :  { %1092 = vmatprep.subr.bf16.mxu1 %v1246_v2 }
 0x111   :  { %1093 = vmatpush3.bf16.msra.mxu1 %v1174_v40  ;;  %v1199_v40 = vld [vmem:[%s1623_s15 + $0x30] ss:$8 sps:$4 sm:$0xff]  }
 0x112   :  { %1094 = vmatprep.subr.bf16.mxu1 %v1246_v2 }
 0x115   :  { %1095 = vmatpush3.bf16.msra.mxu1 %v1175_v41  ;;  %v1204_v41 = vld [vmem:[%s1623_s15 + $0x44] ss:$8 sps:$4 sm:$0xff]  }
 0x116   :  { %1100 = vmatprep.subr.bf16.mxu1 %v1246_v2 }
 0x1db   :  { %v346_v43 = vpop.f32.mrb[0].mxu1 }
 0x1dc   :  { %v347_v44 = vadd.f32 %v960_v42, %v346_v43  ;;  %v1086_v45 = vpop.f32.mrb[1].mxu1  ;;  %v1202_v42 = vld [vmem:[%s1623_s15 + $0x40] ss:$8 sps:$4 sm:$0xff]   ;;  %v1207_v43 = vld [vmem:[%s1623_s15 + $0x54] ss:$8 sps:$4 sm:$0xff]  }
 0x1dd   :  { %v349_v47 = vpop.f32.mrb[2].mxu1  ;;  %v1210_v45 = vld [vmem:[%s1623_s15 + $0x64] ss:$8 sps:$4 sm:$0xff]  }
 0x1de   :  { %v352_v48 = vmax.f32 %v347_v44, 0.0  ;;  %v1087_v49 = vpop.f32.mrb[3].mxu1  ;;  %v1205_v44 = vld [vmem:[%s1623_s15 + $0x50] ss:$8 sps:$4 sm:$0xff]   ;;  %v1213_v47 = vld [vmem:[%s1623_s15 + $0x74] ss:$8 sps:$4 sm:$0xff]  }
 0x1df   :  { %v1248_v49 = vmov 0  }
 0x1e0   :  { %v353_v50 = vpack.c.bf16 %v352_v48, %v352_v48  ;;  %v1211_v48 = vld [vmem:[%s1623_s15 + $0x70] ss:$8 sps:$4 sm:$0xff]  }
 0x1e2   :  { %1097 = vmatmul.mubr.msk.bf16.vlgmr.msra.gmra.mrb[4].mxu1 %vm393_vm2, %v353_v50  ;;  %v990_v50 = vld [vmem:[%s1622_s14] ss:$0 sm:$0xff]  ;;  %s1249_s14 = smov [#allocation2]  }
 0x1e3   :  { %1101 = vmatpush3.bf16.msra.mxu1 %v459_v51  ;;  %1102 = vmatprep.mubr.msk.bf16.mxu1 %vm1247_vm0, %v1246_v2 }
 0x1e4   :  { %1106 = vmatprep.subr.bf16.mxu1 %v1246_v2 }
 0x2b5   :  { %v431_v53 = vpop.f32.mrb[4].mxu1 }
 0x2b6   :  { %v432_v54 = vadd.f32 %v969_v52, %v431_v53  ;;  %v1098_v55 = vpop.f32.mrb[5].mxu1 }
 0x2b7   :  { %v434_v56 = vpop.f32.mrb[6].mxu1 }
 0x2b8   :  { %v437_v57 = vmax.f32 %v432_v54, 0.0  ;;  %v1099_v58 = vpop.f32.mrb[7].mxu1 }
 0x2b9   :  { %v780_v58 = vlaneseq }
 0x2ba   :  { %v438_v60 = vpack.c.bf16 %v437_v57, %v437_v57 }
 0x2bc   :  { %1103 = vmatmul.mubr.msk.bf16.vlgmr.msra.gmra.mrb[8].mxu1 %vm453_vm3, %v438_v60 }
 0x2bd   :  { %1107 = vmatpush3.bf16.msra.mxu1 %v1177_v59  ;;  %1122 = vmatprep.mubr.msk.bf16.mxu1 %vm1247_vm0, %v1246_v2  ;;  %v781_v59 = vshrl.u32 %v780_v58, 7 }
 0x2be   :  { %1108 = vmatprep.subr.bf16.mxu1 %v1246_v2 }
 0x2bf   :  { %v782_v60 = vsub.s32 0, %v781_v59 }
 0x2c1   :  { %1109 = vmatpush3.bf16.msra.mxu1 %v1178_v61  ;;  %v778_v61 = vld [vmem:[%s1624_s16] sm:$0x3]  ;;  %s931_s16 = sshll.u32 %s1249_s14, 4  ;;  %s932_s16 = int_to_ptr.vmem [resolvable:$true] %s931_s16 }
 0x2c2   :  { %1110 = vmatprep.subr.bf16.mxu1 %v1246_v2  ;;  %s1222_s20 = scalar_lea.vmem %s932_s16, 256  ;;  %p1227_p1 = scmp.lt.s32.totalorder %s932_s16, %s932_s16 }
 0x2c3   :  { %p1223_p0 = scmp.ne.s32.totalorder %s932_s16, %s1222_s20  ;;  %p1228_p2 = scmp.lt.s32.totalorder %s1222_s20, %s1222_s20 }
 0x2c5   :  { %1111 = vmatpush3.bf16.msra.mxu1 %v1179_v62  ;;  %v786_v62 = vsub.s32 1, %v781_v59  ;;  %p1229_p3 = por %p1228_p2, %p1227_p1 }
 0x2c6   :  { %1112 = vmatprep.subr.bf16.mxu1 %v1246_v2 }
 0x2c7   :  { %p1230_p4 = pnand %p1229_p3, %p1223_p0 }
 0x2c9   :  { %1113 = vmatpush3.bf16.msra.mxu1 %v1180_v63  ;;  %v783_v63 = vrot.slane %v778_v61, %v782_v60 }
 0x2ca   :  { %1114 = vmatprep.subr.bf16.mxu1 %v1246_v2 }
 0x2cd   :  { %1115 = vmatpush3.bf16.msra.mxu1 %v1181_v0  ;;  %v787_v0 = vrot.slane %v778_v61, %v786_v62 }
 0x2ce   :  { %1116 = vmatprep.subr.bf16.mxu1 %v1246_v2 }
 0x2d1   :  { %1117 = vmatpush3.bf16.msra.mxu1 %v1182_v1 }
 0x2d2   :  { %1118 = vmatprep.subr.bf16.mxu1 %v1246_v2 }
 0x2d5   :  { %1119 = vmatpush3.bf16.msra.mxu1 %v1183_v3 }
 0x2d6   :  { %1120 = vmatprep.subr.bf16.mxu1 %v1246_v2 }
 0x2d9   :  { %1121 = vmatpush3.bf16.msra.mxu1 %v1184_v4 }
 0x38f   :  { %v495_v8 = vpop.f32.mrb[8].mxu1 }
 0x390   :  { %v496_v9 = vadd.f32 %v975_v7, %v495_v8  ;;  %v1104_v10 = vpop.f32.mrb[9].mxu1 }
 0x391   :  { %v498_v11 = vpop.f32.mrb[10].mxu1 }
 0x392   :  { %v501_v12 = vpack.c.bf16 %v496_v9, %v496_v9  ;;  %v1105_v13 = vpop.f32.mrb[11].mxu1 }
 0x394   :  { %502 = vst [vmem:[%s1626_s18] sm:$0xf] %v501_v12  ;;  %1123 = vmatmul.mubr.bf16.vlgmr.msra.gmra.mrb[12].mxu1 %v501_v12 }
 0x467   :  { %v608_v15 = vpop.f32.mrb[12].mxu1 }
 0x468   :  { %v609_v16 = vadd.f32 %v978_v14, %v608_v15  ;;  %v1124_v17 = vpop.f32.mrb[13].mxu1 }
 0x469   :  { %v611_v18 = vpop.f32.mrb[14].mxu1 }
 0x46a   :  { %v614_v19 = vmax.f32 %v609_v16, 0.0  ;;  %v1125_v20 = vpop.f32.mrb[15].mxu1 }
 0x46c   :  { %v615_v22 = vpack.c.bf16 %v614_v19, %v614_v19 }
 0x46e   :  { %1129 = vmatmul.mubr.msk.bf16.vlgmr.msra.gmra.mrb[4].mxu0 %vm453_vm3, %v615_v22 }
 0x46f   :  { %1133 = vmatpush3.bf16.msra.mxu0 %v1186_v21  ;;  %1140 = vmatprep.mubr.msk.bf16.mxu0 %vm1247_vm0, %v1246_v2 }
 0x470   :  { %1134 = vmatprep.subr.bf16.mxu0 %v1246_v2 }
 0x473   :  { %1135 = vmatpush3.bf16.msra.mxu0 %v1187_v23 }
 0x474   :  { %1136 = vmatprep.subr.bf16.mxu0 %v1246_v2 }
 0x477   :  { %1137 = vmatpush3.bf16.msra.mxu0 %v1188_v24 }
 0x478   :  { %1138 = vmatprep.subr.bf16.mxu0 %v1246_v2 }
 0x47b   :  { %1139 = vmatpush3.bf16.msra.mxu0 %v1189_v25 }
 0x47c   :  { %870 = vmatprep.subr.bf16.mxu0 %v1192_v26 }
 0x541   :  { %v670_v28 = vpop.f32.mrb[4].mxu0 }
 0x542   :  { %v671_v29 = vadd.f32 %v987_v27, %v670_v28  ;;  %v1130_v30 = vpop.f32.mrb[5].mxu0 }
 0x543   :  { %v673_v31 = vpop.f32.mrb[6].mxu0 }
 0x544   :  { %v676_v32 = vmax.f32 %v671_v29, 0.0  ;;  %v1131_v2 = vpop.f32.mrb[7].mxu0 }
 0x546   :  { %v677_v34 = vpack.c.bf16 %v676_v32, %v676_v32 }
 0x548   :  { %1141 = vmatmul.mubr.msk.bf16.vlgmr.msra.gmra.mrb[8].mxu0 %vm393_vm2, %v677_v34 }
 0x549   :  { %871 = vmatpush1.bf16.msra.mxu0 %v1190_v33  ;;  %902 = vmatprep.mubr.bf16.mxu0 %v1248_v49 }
 0x54a   :  { %872 = vmatprep.subr.bf16.mxu0 %v1195_v35 }
 0x54d   :  { %873 = vmatpush1.bf16.msra.mxu0 %v1193_v36 }
 0x54e   :  { %874 = vmatprep.subr.bf16.mxu0 %v1198_v37 }
 0x551   :  { %875 = vmatpush1.bf16.msra.mxu0 %v1196_v38 }
 0x552   :  { %876 = vmatprep.subr.bf16.mxu0 %v1201_v39 }
 0x555   :  { %877 = vmatpush1.bf16.msra.mxu0 %v1199_v40 }
 0x556   :  { %878 = vmatprep.subr.bf16.mxu0 %v1204_v41 }
 0x559   :  { %879 = vmatpush1.bf16.msra.mxu0 %v1202_v42 }
 0x55a   :  { %880 = vmatprep.subr.bf16.mxu0 %v1207_v43 }
 0x55d   :  { %881 = vmatpush1.bf16.msra.mxu0 %v1205_v44 }
 0x55e   :  { %882 = vmatprep.subr.bf16.mxu0 %v1210_v45 }
 0x561   :  { %883 = vmatpush1.bf16.msra.mxu0 %v1208_v46 }
 0x562   :  { %884 = vmatprep.subr.bf16.mxu0 %v1213_v47 }
 0x565   :  { %885 = vmatpush1.bf16.msra.mxu0 %v1211_v48 }
 0x61b   :  { %v754_v51 = vpop.f32.mrb[8].mxu0 }
 0x61c   :  { %v755_v52 = vadd.f32 %v990_v50, %v754_v51  ;;  %v1142_v53 = vpop.f32.mrb[9].mxu0 }
 0x61d   :  { %v757_v54 = vpop.f32.mrb[10].mxu0 }
 0x61e   :  { %v760_v55 = vmax.f32 %v755_v52, 0.0  ;;  %v1143_v56 = vpop.f32.mrb[11].mxu0 }
 0x620   :  { %v761_v57 = vpack.c.bf16 %v760_v55, %v760_v55 }
 0x622   :  { %903 = vmatmul.mubr.bf16.vlgmr.msra.gmra.mrb[12].mxu0 %v761_v57 }
 0x6f5   :  { %v904_v1 = vpop.f32.mrb[12].mxu0 }
 0x6f6   :  { %v905_v3 = vadd.f32 %v904_v1, %v783_v63  ;;  %v906_v4 = vpop.f32.mrb[13].mxu0 }
 0x6f7   :  { %v907_v5 = vadd.f32 %v906_v4, %v787_v0  ;;  %v908_v6 = vpop.f32.mrb[14].mxu0 }
 0x6f8   :  { %v1012_v7 = vmul.f32 -1.442695, %v905_v3  ;;  %v909_v8 = vpop.f32.mrb[15].mxu0 }
 0x6f9   :  { %v1013_v9 = vmul.f32 -1.442695, %v907_v5 }
 0x6fa   :  { %1214 = vpow2.f32 %v1012_v7 }
 0x6fb   :  { %1216 = vpow2.f32 %v1013_v9 }
 0x704   :  { %v1215_v10 = vpop.eup %1214 }
 0x705   :  { %v1217_v11 = vpop.eup %1216  ;;  %v917_v12 = vadd.f32 1.0, %v1215_v10 }
 0x706   :  { %v918_v13 = vadd.f32 1.0, %v1217_v11 }
 0x707   :  { %1218 = vrcp.f32 %v917_v12 }
 0x708   :  { %1220 = vrcp.f32 %v918_v13 }
 0x711   :  { %v1219_v14 = vpop.eup %1218 }
 0x712   :  { %v1221_v15 = vpop.eup %1220  ;;  %923 = vst [vmem:[#allocation2] sm:$0xff] %v1219_v14 }
 0x713   :  { %924 = vst [vmem:[#allocation2 + $0x8] sm:$0xff] %v1221_v15 }
 0x714   :  { %1233 = shalt.err (!%p1230_p4)
}
 0x715   :  { %s1234_s4 = scalar_lea.hbm %s1625_s17, 256 }
 0x716   :  { %p1235_p5 = scmp.ne.s32.totalorder %s1625_s17, %s1234_s4  ;;  %p1238_p6 = scmp.lt.u32.totalorder %s1234_s4, %s1625_s17 }
 0x718   :  { %p1240_p7 = pnand %p1238_p6, %p1235_p5 }
 0x71a   :  { %1243 = shalt.err (!%p1240_p7)
}
 0x71b   :  { %934 = dma.vmem_to_hbm [thread:$0]  %s932_s16, 256, %s1625_s17, [#allocation3]  }
 0x71c   :  { %1244 = dma.done.wait [#allocation3], 256  }
 0x71d   :  { %1245 = vsyncadd [#allocation3], 4294967040 }
 0x71e   :  { %942 = vsyncpa [#allocation3], 1 }

</bundles_post_ra>
